<compile_context>
chip_gen: v5e
topology: v5e:2x2
jax: 0.10.0
libtpu: 0.0.40
codegen_flags: <defaults>
</compile_context>

<pallas_src>
import functools

import jax
import jax.numpy as jnp
from jax.experimental import pallas as pl
from jax.experimental.pallas import tpu as pltpu


def _round_up(x, m):
    return ((x + m - 1) // m) * m


def _pick_tile(dim, pref):
    """Largest multiple of 128 <= pref that divides dim (dim is a multiple of 128)."""
    t = max(128, (min(pref, dim) // 128) * 128)
    while dim % t:
        t -= 128
    return t


_RESIDENT_VMEM_BUDGET = 36 * 1024 * 1024   # leaves headroom under v7x's 64 MiB VMEM
_VMEM_LIMIT_CAP = 48 * 1024 * 1024


# ----------------------- MXU matmul + bias (two variants) ---------------------

def _mm_bias_resident_kernel(a_ref, b_ref, bias_ref, o_ref):
    # b (node features) is whole in VMEM; a (A_hat) is streamed in M stripes.
    o_ref[...] = (jnp.dot(a_ref[...], b_ref[...],
                          preferred_element_type=jnp.float32)
                  + bias_ref[...]).astype(o_ref.dtype)


def _mm_bias_tiled_kernel(a_ref, b_ref, bias_ref, o_ref, acc_ref):
    k = pl.program_id(2)

    @pl.when(k == 0)
    def _():
        acc_ref[...] = jnp.zeros_like(acc_ref)

    acc_ref[...] += jnp.dot(a_ref[...], b_ref[...],
                            preferred_element_type=jnp.float32)

    @pl.when(k == pl.num_programs(2) - 1)
    def _():
        o_ref[...] = (acc_ref[...] + bias_ref[...]).astype(o_ref.dtype)


def matmul_bias_padded(a_p, b, bias_p, *, tm=512, tn=256, tk=512, force_mode=None):
    """out = a_p @ b + bias_p on pre-padded operands.

    a_p    : (Mp, Kp) bf16, pre-padded (pad + cast hoisted out of the layer loop).
    b      : (Kp, Np) float, cast to bf16 here (small: Np is one lane tile for GCN).
    bias_p : (1, Np) f32, broadcast over rows.
    Mp / Kp / Np must be multiples of 128.  Returns the padded (Mp, Np) f32 product.
    """
    Mp, Kp = a_p.shape
    Kp2, Np = b.shape
    assert Kp == Kp2 and bias_p.shape == (1, Np)
    assert Mp % 128 == 0 and Kp % 128 == 0 and Np % 128 == 0
    b_p = b.astype(jnp.bfloat16)
    bias_p = bias_p.astype(jnp.float32)

    tm = _pick_tile(Mp, tm)
    tn = _pick_tile(Np, tn)
    tk = _pick_tile(Kp, tk)
    if Mp // tm == 1 and Mp >= 256:
        tm = Mp // 2          # give both v7x TensorCores an M stripe

    def resident_bytes(tm_):
        # double-buffered a stripes + whole b (x2, conservative) + bias + out tiles
        return (2 * tm_ * Kp * 2 + 2 * Kp * Np * 2 + 2 * Np * 4 * 2
                + 2 * tm_ * Np * 4)

    mode = force_mode
    if mode is None:
        mode = "tiled"
        for cand in (tm, 256, 128):
            if (cand <= Mp and Mp % cand == 0
                    and resident_bytes(cand) <= _RESIDENT_VMEM_BUDGET):
                tm, mode = cand, "resident"
                break

    if mode == "resident":
        bufs = resident_bytes(tm)
        vmem_limit = int(min(max(bufs * 5 // 4, 16 << 20), _VMEM_LIMIT_CAP))
        return pl.pallas_call(
            _mm_bias_resident_kernel,
            out_shape=jax.ShapeDtypeStruct((Mp, Np), jnp.float32),
            grid=(Mp // tm,),
            in_specs=[
                pl.BlockSpec((tm, Kp), lambda i: (i, 0)),
                pl.BlockSpec((Kp, Np), lambda i: (0, 0)),   # constant index: 1 fetch
                pl.BlockSpec((1, Np), lambda i: (0, 0)),
            ],
            out_specs=pl.BlockSpec((tm, Np), lambda i: (i, 0)),
            compiler_params=pltpu.CompilerParams(
                dimension_semantics=("parallel",),
                vmem_limit_bytes=vmem_limit),
        )(a_p, b_p, bias_p)

    bufs = 2 * (tm * tk * 2 + tk * tn * 2 + tn * 4 + tm * tn * 4) + tm * tn * 4
    vmem_limit = int(min(max(bufs * 5 // 4, 16 << 20), _VMEM_LIMIT_CAP))
    return pl.pallas_call(
        _mm_bias_tiled_kernel,
        out_shape=jax.ShapeDtypeStruct((Mp, Np), jnp.float32),
        grid=(Mp // tm, Np // tn, Kp // tk),
        in_specs=[
            pl.BlockSpec((tm, tk), lambda i, j, k: (i, k)),
            pl.BlockSpec((tk, tn), lambda i, j, k: (k, j)),
            pl.BlockSpec((1, tn), lambda i, j, k: (0, j)),
        ],
        out_specs=pl.BlockSpec((tm, tn), lambda i, j, k: (i, j)),
        scratch_shapes=[pltpu.VMEM((tm, tn), jnp.float32)],
        compiler_params=pltpu.CompilerParams(
            dimension_semantics=("parallel", "parallel", "arbitrary"),
            vmem_limit_bytes=vmem_limit),
    )(a_p, b_p, bias_p)


# ------------------------ additive attention over behaviors -------------------

def _additive_attn_kernel(e_ref, wpT_ref, bpq_ref, o_ref):
    B, TU, D = e_ref.shape
    e = e_ref[...].astype(jnp.float32)                          # (B, TU, D)
    # one lane-dense MXU matmul on the flattened (B*TU, D) slab
    h = jnp.tanh(
        jnp.dot(e.reshape(B * TU, D).astype(jnp.bfloat16), wpT_ref[...],
                preferred_element_type=jnp.float32)
        + bpq_ref[0:1, :])
    s = jnp.sum(h * bpq_ref[1:2, :], axis=-1, keepdims=True)    # (B*TU, 1)
    s = s.reshape(B, TU, 1)
    m = jnp.max(s, axis=0, keepdims=True)                       # softmax over behaviors
    p = jnp.exp(s - m)
    w = p / jnp.sum(p, axis=0, keepdims=True)                   # exact reciprocal
    o_ref[...] = jnp.sum(w * e, axis=0)


def additive_attention(e, wp, bp, q, *, tu=256):
    """e: (B, U, D) behavior-stacked user embeddings; wp is torch's Linear weight
    (out, in).  Returns attention-pooled (U, D) user embeddings."""
    B, U, D = e.shape
    Dp = _round_up(D, 128)
    tu = min(tu, _round_up(U, 8))
    Up = _round_up(U, tu)

    # Input streamed as bf16 at the TRUE feature width (no 4x lane padding of the
    # big operand); only the weight / query side is padded to a full lane tile.
    e_p = jnp.zeros((B, Up, D), jnp.bfloat16).at[:, :U, :].set(e.astype(jnp.bfloat16))
    wpT_p = jnp.zeros((D, Dp), jnp.bfloat16).at[:, :D].set(wp.T.astype(jnp.bfloat16))
    bpq_p = jnp.zeros((2, Dp), jnp.float32)
    bpq_p = bpq_p.at[0, :D].set(bp.astype(jnp.float32))
    bpq_p = bpq_p.at[1, :D].set(q.astype(jnp.float32))

    out = pl.pallas_call(
        _additive_attn_kernel,
        out_shape=jax.ShapeDtypeStruct((Up, D), jnp.float32),
        grid=(Up // tu,),
        in_specs=[
            pl.BlockSpec((B, tu, D), lambda i: (0, i, 0)),
            pl.BlockSpec((D, Dp), lambda i: (0, 0)),
            pl.BlockSpec((2, Dp), lambda i: (0, 0)),
        ],
        out_specs=pl.BlockSpec((tu, D), lambda i: (i, 0)),
        compiler_params=pltpu.CompilerParams(
            dimension_semantics=("parallel",)),
    )(e_p, wpT_p, bpq_p)
    return out[:U, :]


# ------------------------------ graph glue ------------------------------------

def build_norm_adj(edge_index, prior_index, num_nodes, pad_to=None, dtype=jnp.float32):
    """Dense D^{-1/2} A_hat D^{-1/2} exactly as GCNConv.forward computes it.
    Built directly at the padded size / target dtype so the MXU operand needs no
    extra pad + cast pass (hoisted out of the per-layer matmul)."""
    if prior_index is not None:
        edge_index = jnp.concatenate([edge_index, prior_index], axis=1)
    n = num_nodes if pad_to is None else pad_to
    row, col = edge_index[0], edge_index[1]
    w = jnp.ones((edge_index.shape[1],), jnp.float32)
    deg = jnp.zeros((n,), jnp.float32).at[col].add(w)
    dinv = jnp.where(deg > 0, jax.lax.rsqrt(deg), 0.0)
    w = dinv[row] * w * dinv[col]
    # message flow source(row) -> target(col), aggr='add':  out = A_hat @ x
    a = jnp.zeros((n, n), jnp.float32).at[col, row].add(w)
    return a.astype(dtype)


def _gcn_pad_size(n):
    n128 = _round_up(n, 128)
    return n128 if n128 < 512 else _round_up(n, 512)


def gcn_propagate(params, edge_indices, n_users_p1, layers):
    total = jnp.concatenate([params['user_emb'], params['item_emb']], axis=0)
    num_nodes, d = total.shape
    n_beh = len(edge_indices)
    Np = _round_up(d, 128)
    Nr = _gcn_pad_size(num_nodes)

    def pad_x(x):
        return jnp.zeros((Nr, Np), jnp.float32).at[:num_nodes, :d].set(x)

    all_emb = []
    prior = None
    x_pad = pad_x(total)
    for i in range(n_beh):
        # TODO(synk): dense A_hat is O(N^2); replace with a scalar-prefetched CSR
        # segment-sum SpMM Pallas kernel for graphs that don't fit HBM densely.
        # Padded bf16 A_hat built ONCE per behavior, reused by all of its layers.
        a_p = build_norm_adj(edge_indices[i], prior, num_nodes,
                             pad_to=Nr, dtype=jnp.bfloat16)
        for l in range(layers[i]):
            bias_p = jnp.zeros((1, Np), jnp.float32).at[0, :d].set(
                params['gcn_bias'][i][l])
            x_pad = matmul_bias_padded(a_p, x_pad, bias_p)   # x stays padded
        total = x_pad[:num_nodes, :d]
        all_emb.append(total)
        if i < n_beh - 1:
            u_part, i_part = total[:n_users_p1], total[n_users_p1:]
            wu, bu = params['user_trans'][i]
            wi, bi = params['item_trans'][i]
            # 32x32 projections: trivial work -> plain XLA dot (no pad/cast/launch).
            total = jnp.concatenate([u_part @ wu.T + bu, i_part @ wi.T + bi], axis=0)
            x_pad = pad_x(total)
            prior = edge_indices[i]
    stacked = jnp.stack(all_emb, axis=0)                      # (B, N, D)
    user_final = additive_attention(stacked[:, :n_users_p1], params['attn_w'],
                                    params['attn_b'], params['attn_q'])
    item_final = jnp.sum(stacked[:, n_users_p1:], axis=0)     # tiny add: XLA glue
    return jnp.concatenate([user_final, item_final], axis=0)


def gcn_propagate_ref(params, edge_indices, n_users_p1, layers):
    """Pure-XLA f32 reference mirroring the torch forward (correctness check)."""
    total = jnp.concatenate([params['user_emb'], params['item_emb']], axis=0)
    num_nodes = total.shape[0]
    all_emb, prior = [], None
    for i in range(len(edge_indices)):
        a_hat = build_norm_adj(edge_indices[i], prior, num_nodes)
        x = total
        for l in range(layers[i]):
            x = a_hat @ x + params['gcn_bias'][i][l]
        total = x
        all_emb.append(total)
        if i < len(edge_indices) - 1:
            u, it = total[:n_users_p1], total[n_users_p1:]
            wu, bu = params['user_trans'][i]
            wi, bi = params['item_trans'][i]
            total = jnp.concatenate([u @ wu.T + bu, it @ wi.T + bi], axis=0)
            prior = edge_indices[i]
    stacked = jnp.stack(all_emb, axis=0)
    ue, ie = stacked[:, :n_users_p1], stacked[:, n_users_p1:]
    h = jnp.tanh(jnp.einsum('bud,qd->buq', ue, params['attn_w']) + params['attn_b'])
    s = jnp.einsum('buq,q->bu', h, params['attn_q'])
    w = jax.nn.softmax(s, axis=0)[..., None]
    user_final = jnp.sum(w * ue, axis=0)
    item_final = jnp.sum(ie, axis=0)
    return jnp.concatenate([user_final, item_final], axis=0)


# ------------------------------ losses / forward -------------------------------

def _mba_loss(final, params, batch_data, n_users_p1, reg_weight):
    # TODO(synk): BPRLoss / EmbLoss bodies are not in the provided snippet; the
    # standard RecBole definitions are used (-log sigmoid(pos-neg) mean, and sum of
    # Frobenius norms / last.shape[0]).  Tiny reductions: left to XLA.
    user_all = final[:n_users_p1]
    item_all = final[n_users_p1:]
    data = batch_data[:, -1]                       # (batch, 3)
    users = data[:, 0]
    items = data[:, 1:]                            # (batch, 2): [pos, neg]
    u_feat = user_all[users]
    pos_s = jnp.sum(u_feat * item_all[items[:, 0]], axis=-1)
    neg_s = jnp.sum(u_feat * item_all[items[:, 1]], axis=-1)
    bpr = jnp.mean(-jnp.log(1e-10 + jax.nn.sigmoid(pos_s - neg_s)))

    def emb_loss(*embs):
        return sum(jnp.sqrt(jnp.sum(e * e)) for e in embs) / embs[-1].shape[0]

    trans_loss = (sum(emb_loss(w) for w, _ in params['user_trans'])
                  + sum(emb_loss(w) for w, _ in params['item_trans']))
    return bpr + reg_weight * (
        emb_loss(params['user_emb'], params['item_emb']) + trans_loss)


def mba_forward(params, edge_indices, batch_data, n_users_p1, layers, reg_weight):
    final = gcn_propagate(params, edge_indices, n_users_p1, layers)
    return _mba_loss(final, params, batch_data, n_users_p1, reg_weight)


def mba_forward_ref(params, edge_indices, batch_data, n_users_p1, layers, reg_weight):
    final = gcn_propagate_ref(params, edge_indices, n_users_p1, layers)
    return _mba_loss(final, params, batch_data, n_users_p1, reg_weight)


# --------------------------- parameter init ----------------------------------

def xavier_uniform(key, shape, gain=1.0):
    fan_out, fan_in = shape[0], shape[1]
    a = gain * (6.0 / (fan_in + fan_out)) ** 0.5
    return jax.random.uniform(key, shape, jnp.float32, -a, a)


def init_params(key, n_users, n_items, d, n_behaviors, layers):
    ks = jax.random.split(key, 6)
    params = {}
    params['user_emb'] = xavier_uniform(ks[0], (n_users + 1, d))
    params['item_emb'] = xavier_uniform(ks[1], (n_items + 1, d))
    bound = 1.0 / (d ** 0.5)

    def linear(k):
        kw, kb = jax.random.split(k)
        w = jax.random.uniform(kw, (d, d), jnp.float32, -bound, bound)
        b = jax.random.uniform(kb, (d,), jnp.float32, -bound, bound)
        return (w, b)

    params['user_trans'] = [linear(k) for k in jax.random.split(ks[2], n_behaviors - 1)]
    params['item_trans'] = [linear(k) for k in jax.random.split(ks[3], n_behaviors - 1)]
    params['attn_w'], params['attn_b'] = linear(ks[4])
    params['attn_q'] = xavier_uniform(ks[5], (d, 1), gain=5.0 / 3.0).reshape(d)
    # GCNConv has only a (zero-initialized) bias, no weight.
    params['gcn_bias'] = [[jnp.zeros((d,), jnp.float32) for _ in range(layers[i])]
                          for i in range(n_behaviors)]
    return params


# ------------------------------ main ------------------------------------------

if __name__ == "__main__":
    # ---- kernel self-test: both matmul variants vs an XLA reference ----
    kt = jax.random.PRNGKey(1)
    ka, kb = jax.random.split(kt)
    A = jax.random.uniform(ka, (256, 384), jnp.float32, -0.5, 0.5)
    Bm = jax.random.uniform(kb, (384, 128), jnp.float32, -0.5, 0.5)
    bias = jnp.linspace(-0.1, 0.1, 128).astype(jnp.float32)
    ref_mm = A @ Bm + bias
    a_bf = A.astype(jnp.bfloat16)
    out_res = matmul_bias_padded(a_bf, Bm, bias.reshape(1, -1), force_mode="resident")
    out_til = matmul_bias_padded(a_bf, Bm, bias.reshape(1, -1), force_mode="tiled",
                                 tm=128, tk=128)
    jax.block_until_ready((out_res, out_til))
    assert float(jnp.max(jnp.abs(out_res - ref_mm))) < 0.1, "resident matmul mismatch"
    assert float(jnp.max(jnp.abs(out_til - ref_mm))) < 0.1, "tiled matmul mismatch"

    # ---- small MBA forward ----
    key = jax.random.PRNGKey(0)
    n_users, n_items, d = 7, 11, 32
    n_behaviors = 3
    layers = (2, 1, 1)
    reg_weight = 1e-3
    U, I = n_users + 1, n_items + 1
    N = U + I

    k_param, k_edge, k_batch = jax.random.split(key, 3)
    params = init_params(k_param, n_users, n_items, d, n_behaviors, layers)

    # random symmetric bipartite user-item edges per behavior (combined node ids)
    edge_indices = []
    for b, ek in enumerate(jax.random.split(k_edge, n_behaviors)):
        k1, k2 = jax.random.split(ek)
        m = 24
        src = jax.random.randint(k1, (m,), 1, U)        # user nodes 1..n_users
        dst = jax.random.randint(k2, (m,), U + 1, N)    # item nodes
        ei = jnp.stack([jnp.concatenate([src, dst]),
                        jnp.concatenate([dst, src])], axis=0).astype(jnp.int32)
        edge_indices.append(ei)

    batch = 4
    kb1, kb2 = jax.random.split(k_batch)
    users = jax.random.randint(kb1, (batch, n_behaviors, 1), 1, U)
    items = jax.random.randint(kb2, (batch, n_behaviors, 2), 1, I)
    batch_data = jnp.concatenate([users, items], axis=2).astype(jnp.int32)

    fwd = jax.jit(functools.partial(
        mba_forward, n_users_p1=U, layers=layers, reg_weight=reg_weight))
    loss = fwd(params, edge_indices, batch_data)
    jax.block_until_ready(loss)

    ref_loss = mba_forward_ref(params, edge_indices, batch_data, U, layers, reg_weight)
    assert jnp.isfinite(loss), "loss is not finite"
    assert abs(float(loss) - float(ref_loss)) < 0.1 * (1.0 + abs(float(ref_loss))), \
        f"loss mismatch: pallas={float(loss):.5f} ref={float(ref_loss):.5f}"
    print("KERNEL_OK")
</pallas_src>

<mosaic_0001>
module attributes {stable_mosaic.version = 11 : i64} {
  func.func @_mm_bias_resident_kernel(%arg0: i32, %arg1: memref<128x384xbf16, #tpu.memory_space<vmem>>, %arg2: memref<384x128xbf16, #tpu.memory_space<vmem>>, %arg3: memref<1x128xf32, #tpu.memory_space<vmem>>, %arg4: memref<128x128xf32, #tpu.memory_space<vmem>>) attributes {dimension_semantics = [#tpu.dimension_semantics<parallel>], iteration_bounds = array<i64: 2>, scalar_prefetch = 0 : i64, scratch_operands = 0 : i64, tpu.core_type = #tpu.core_type<tc>, window_params = [{transform_indices = @transform_0, window_bounds = array<i64: 128, 384>}, {pipeline_mode = #tpu.pipeline_mode<synchronous>, transform_indices = @transform_1, window_bounds = array<i64: 384, 128>}, {pipeline_mode = #tpu.pipeline_mode<synchronous>, transform_indices = @transform_2, window_bounds = array<i64: 1, 128>}, {transform_indices = @transform_3, window_bounds = array<i64: 128, 128>}]} {
    %c0 = arith.constant 0 : index
    %c0_0 = arith.constant 0 : index
    %0 = vector.load %arg1[%c0, %c0_0] : memref<128x384xbf16, #tpu.memory_space<vmem>>, vector<128x384xbf16>
    %c0_1 = arith.constant 0 : index
    %c0_2 = arith.constant 0 : index
    %1 = vector.load %arg2[%c0_1, %c0_2] : memref<384x128xbf16, #tpu.memory_space<vmem>>, vector<384x128xbf16>
    %cst = arith.constant dense<0.000000e+00> : vector<128x128xf32>
    %2 = tpu.matmul %0, %1, %cst {dimension_numbers = #tpu.dot_dimension_numbers<[1], [0], [0], [1], [0, 0, 1, 1], [], []>} : vector<128x384xbf16>, vector<384x128xbf16>, vector<128x128xf32> -> vector<128x128xf32>
    %c0_3 = arith.constant 0 : index
    %c0_4 = arith.constant 0 : index
    %3 = vector.load %arg3[%c0_3, %c0_4] : memref<1x128xf32, #tpu.memory_space<vmem>>, vector<1x128xf32>
    %4 = vector.broadcast %3 : vector<1x128xf32> to vector<128x128xf32>
    %5 = arith.addf %2, %4 : vector<128x128xf32>
    %c0_5 = arith.constant 0 : index
    %c0_6 = arith.constant 0 : index
    %6 = vector.load %arg4[%c0_5, %c0_6] : memref<128x128xf32, #tpu.memory_space<vmem>>, vector<128x128xf32>
    tpu.vector_store %arg4[%c0_5, %c0_6], %5 {strides = array<i32>} : memref<128x128xf32, #tpu.memory_space<vmem>>, vector<128x128xf32>,
    return
  }
  func.func @transform_0(%arg0: i32) -> (i32, i32) {
    %c0_i32 = arith.constant 0 : i32
    %c0_i32_0 = arith.constant 0 : i32
    return %arg0, %c0_i32 : i32, i32
  }
  func.func @transform_1(%arg0: i32) -> (i32, i32) {
    %c0_i32 = arith.constant 0 : i32
    %c0_i32_0 = arith.constant 0 : i32
    %c0_i32_1 = arith.constant 0 : i32
    return %c0_i32, %c0_i32_0 : i32, i32
  }
  func.func @transform_2(%arg0: i32) -> (i32, i32) {
    %c0_i32 = arith.constant 0 : i32
    %c0_i32_0 = arith.constant 0 : i32
    %c0_i32_1 = arith.constant 0 : i32
    return %c0_i32, %c0_i32_0 : i32, i32
  }
  func.func @transform_3(%arg0: i32) -> (i32, i32) {
    %c0_i32 = arith.constant 0 : i32
    %c0_i32_0 = arith.constant 0 : i32
    return %arg0, %c0_i32 : i32, i32
  }
}

</mosaic_0001>

<bundles_post_ra>
// kernel: tpu_custom_call.1
= control target key start
LH: loop header
LB: loop body
LE: loop exit
PB: predicated region body
PF: predicated region fallthrough
CT: control target
= control target key end

     0   :  { %8 = vsyncpa [#allocation3], 0  ;;  %s1616_s0 = inlined_call_operand.hbm [shape: bf16[256,384], index: 0, kind: input, shape index: {}]   ;;  %s1617_s1 = inlined_call_operand.hbm [shape: bf16[384,128], index: 1, kind: input, shape index: {}]   ;;  %s1618_s2 = inlined_call_operand.vmem [shape: f32[1,128], index: 2, kind: input, shape index: {}]   ;;  %s1619_s3 = inlined_call_operand.hbm [shape: f32[256,128], index: 3, kind: output, shape index: {}]  }
   0x1   :  { %10 = vsyncpa [#allocation3 + $0x1], 0 }
   0x2   :  { %11 = vsyncpa [#allocation6], 0 }
   0x3   :  { %12 = vsyncpa [#allocation4], 0 }
   0x4   :  { %14 = vsyncpa [#allocation4 + $0x1], 0  ;;  %s1335_s12 = smov 0   ;;  %s1337_s13 = smov 0  }
   0x5   :  { %s1339_s14 = smov 0   ;;  %s1341_s15 = smov 0  }
   0x6 LB: > { %s1356_s16 = sadd.s32 4294967295, %s1306_s15   ;;  %s829_s17 = sadd.s32 4294967294, %s1306_s15   ;;  %s1306_s15 = sphi %s1341_s15, %s1629_s15   ;;  %s1302_s14 = sphi %s1339_s14, %s1628_s14   ;;  %s1298_s13 = sphi %s1337_s13, %s1627_s13   ;;  %s1294_s12 = sphi %s1335_s12, %s1626_s12  }
   0x7   : > { %p40_p0 = scmp.ne.s32.totalorder %s1298_s13, %s1294_s12  ;;  %p41_p1 = scmp.eq.s32.totalorder %s1356_s16, 0 }
   0x8   : > { %p106_p2 = scmp.eq.s32.totalorder %s1356_s16, 1  ;;  %p112_p3 = scmp.eq.s32.totalorder %s829_s17, 1 }
   0x9   : > { %p1365_p4 = por %p41_p1, %p40_p0  ;;  %p830_p5 = scmp.ge.s32.totalorder %s1306_s15, 1 }
   0xa   : > { %p1370_p6 = por %p112_p3, %p40_p0  ;;  %p119_p7 = scmp.lt.s32.totalorder %s1306_s15, 3 }
   0xb   : > { %s130_s22 = sshll.u32 %s1617_s1, 4  ;;  %s1308_s24 = smov [#allocation5]   ;;  %s131_s22 = int_to_ptr.hbm [resolvable:$true] %s130_s22 }
   0xc   : > { %p1378_p8 = pnand %p830_p5, %p119_p7  ;;  %s132_s25 = sshll.u32 %s1308_s24, 4  ;;  %s133_s25 = int_to_ptr.vmem [resolvable:$true] %s132_s25 }
   0xd   : > { %s1388_s26 = sadd.s32 1, %s1306_s15   ;;  %s1309_s27 = smov 64  }
   0xe   : > { %p1120_p9 = pneg %p1378_p8  ;;  %s1310_s28 = smov 4  }
   0xf   : > { %s24_s29 = ssub.s32 %s1306_s15, %s1388_s26  ;;  %s27_s30 = sadd.s32 1, %s1302_s14 }
  0x10   : > { %p1121_p10 = pnand %p1120_p9, %p41_p1  ;;  %p25_p12 = scmp.eq.s32.totalorder %s24_s29, 0 }
  0x11   : > { %p34_p13 = scmp.ne.s32.totalorder %s1302_s14, %s1298_s13  ;;  %p35_p0 = scmp.eq.s32.totalorder %s1306_s15, 0 }
  0x12   : > { %1123 = dma.hbm_to_vmem [thread:$0]  (!%p1121_p10), %s131_s22, 3072, %s133_s25, [#allocation6], %s1309_s27, %s1309_s27, %s1310_s28  }
  0x13   : > { %p1133_p3 = scmp.lt.s32.totalorder %s1306_s15, 2  ;;  %p36_p5 = por %p35_p0, %p34_p13 }
  0x14   : > { %s1398_s4 = scalar_select %p25_p12, %s1302_s14, %s27_s30  }
  0x15   : > { %p1402_p7 = por %p106_p2, %p34_p13  ;;  %s149_s6 = sand.u32 1, %s1302_s14  }
  0x16   : > { %s1110_s7 = smul.u32 192, %s1306_s15  ;;  %p1411_p9 = pnand %p1133_p3, %p36_p5 }
  0x17   : > { %s1109_s8 = smul.u32 192, %s149_s6  ;;  %s150_s24 = scalar_lea.sflag [#allocation3], %s149_s6 }
  0x18   : > { %s159_s11 = scalar_lea.hbm %s1616_s0, %s1110_s7  ;;  %p1210_p10 = pneg %p1411_p9 }
  0x19   : > { %s160_s20 = sshll.u32 %s159_s11, 4  ;;  %s153_s21 = scalar_lea.vmem [#allocation2], %s1109_s8  ;;  %s161_s20 = int_to_ptr.hbm [resolvable:$true] %s160_s20 }
  0x1a   : > { %s162_s22 = sshll.u32 %s153_s21, 4  ;;  %s1206_s25 = sshra.s32 %s161_s20, 4  ;;  %s163_s22 = int_to_ptr.vmem [resolvable:$true] %s162_s22  ;;  %s1207_s25 = int_to_ptr.hbm [resolvable:$true] %s1206_s25 }
  0x1b   : > { %s1208_s27 = scalar_lea.hbm %s1207_s25, 192  ;;  %s1213_s30 = scalar_lea.hbm %s1616_s0, 384 }
  0x1c   : > { %p1209_p2 = scmp.ne.s32.totalorder %s1207_s25, %s1208_s27  ;;  %p1214_p0 = scmp.lt.s32.totalorder %s1207_s25, %s1616_s0 }
  0x1d   : > { %p1215_p3 = scmp.lt.s32.totalorder %s1213_s30, %s1208_s27 }
  0x1e   : > { %p1211_p12 = pnand %p1210_p10, %p1209_p2 }
  0x1f   : > { %p1216_p5 = por %p1215_p3, %p1214_p0 }
  0x20   : > { %p1212_p13 = pneg %p1211_p12 }
  0x22   : > { %p1217_p11 = pnand %p1216_p5, %p1212_p13 }
  0x24   : > { %1220 = shalt.err (!%p1217_p11)
}
  0x25   : > { %s1311_s6 = smov 192   ;;  %s1312_s8 = smov 12  }
  0x26   : > { %1127 = dma.hbm_to_vmem [thread:$0]  (!%p1411_p9), %s161_s20, 3072, %s163_s22, %s150_s24, %s1311_s6, %s1311_s6, %s1312_s8  }
  0x27   : > { %174 = sbr.rel (%p1378_p8) target bundleno = 307 (0x133), region = 32  ;;  %s1428_s10 = sand.u32 (!%p1378_p8), 1, %s1298_s13  }
  0x28   : > { %s1111_s11 = smul.u32 (!%p1378_p8), 192, %s1428_s10  ;;  %s177_s21 = scalar_lea.sflag (!%p1378_p8), [#allocation3], %s1428_s10 }
  0x2a   : > { %s1432_s25 = scalar_lea.vmem (!%p1378_p8), [#allocation2], %s1111_s11 }
  0x2c   : > { %1281 = dma.done.wait (%p1365_p4), %s177_s21, 3072  }
  0x2d   : > { %1283 = vsyncadd (%p1365_p4), %s177_s21, 4294964224 }
  0x2e   : > { %1285 = dma.done.wait (%p41_p1), [#allocation6], 3072  }
  0x2f   : > { %1287 = vsyncadd (%p41_p1), [#allocation6], 4294964224  ;;  %v1067_v0 = vld [vmem:[#allocation5 + $0x38] sm:$0xff]  ;;  %v1066_v3 = vld [vmem:[#allocation5 + $0x30] sm:$0xff]  ;;  %s838_s17 = sshll.u32 %s1428_s10, 7  ;;  %s1084_s22 = sshll.u32 %s1356_s16, 7 }
  0x30   : > { %v1442_v1 = vld [vmem:[#allocation5 + $0x78] sm:$0xff]  ;;  %567 = vmatpush.bf16.msra.mxu0 %v1067_v0  ;;  %1085 = vmatpush.bf16.msra.mxu3 %v1067_v0  ;;  %v1448_v4 = vld [vmem:[#allocation5 + $0x70] sm:$0xff]  ;;  %v1065_v6 = vld [vmem:[#allocation5 + $0x28] sm:$0xff]  ;;  %s1539_s20 = scalar_lea.vmem [#allocation7], %s838_s17  ;;  %s742_s28 = scalar_lea.hbm %s1619_s3, %s1084_s22 }
  0x31   : > { %v1444_v2 = vld [vmem:[#allocation5 + $0xb8] sm:$0xff]  ;;  %616 = vmatpush.bf16.msra.mxu1 %v1442_v1  ;;  %v1450_v5 = vld [vmem:[#allocation5 + $0xb0] sm:$0xff]  ;;  %v1073_v7 = vld [vmem:[#allocation5 + $0x68] sm:$0xff]  ;;  %s743_s29 = sshll.u32 %s1539_s20, 4  ;;  %s745_s16 = sshll.u32 %s742_s28, 4  ;;  %s744_s29 = int_to_ptr.vmem [resolvable:$true] %s743_s29  ;;  %s746_s16 = int_to_ptr.hbm [resolvable:$true] %s745_s16 }
  0x32   : > { %665 = vmatpush.bf16.msra.mxu2 %v1444_v2  ;;  %v1454_v8 = vld [vmem:[#allocation5 + $0xa8] sm:$0xff]  ;;  %v1064_v9 = vld [vmem:[#allocation5 + $0x20] sm:$0xff]  ;;  %v1063_v12 = vld [vmem:[#allocation5 + $0x18] sm:$0xff]  ;;  %s731_s30 = scalar_lea.sflag [#allocation4], %s1428_s10  ;;  %s1250_s7 = sshra.s32 %s746_s16, 4  ;;  %s1251_s7 = int_to_ptr.hbm [resolvable:$true] %s1250_s7 }
  0x33   : > { %v1072_v10 = vld [vmem:[#allocation5 + $0x60] sm:$0xff]  ;;  %v1071_v13 = vld [vmem:[#allocation5 + $0x58] sm:$0xff]  ;;  %v1062_v15 = vld [vmem:[#allocation5 + $0x10] sm:$0xff]  ;;  %s1252_s9 = scalar_lea.hbm %s1251_s7, 128  ;;  %s1256_s11 = scalar_lea.hbm %s1619_s3, 256 }
  0x34   : > { %568 = vmatpush.bf16.msra.mxu0 %v1066_v3  ;;  %1086 = vmatpush.bf16.msra.mxu3 %v1066_v3  ;;  %v1457_v11 = vld [vmem:[#allocation5 + $0xa0] sm:$0xff]  ;;  %v1460_v14 = vld [vmem:[#allocation5 + $0x98] sm:$0xff]  ;;  %v1070_v16 = vld [vmem:[#allocation5 + $0x50] sm:$0xff]  ;;  %p1253_p1 = scmp.ne.s32.totalorder %s1251_s7, %s1252_s9  ;;  %p1257_p11 = scmp.lt.s32.totalorder %s1251_s7, %s1619_s3 }
  0x35   : > { %617 = vmatpush.bf16.msra.mxu1 %v1448_v4  ;;  %v1463_v17 = vld [vmem:[#allocation5 + $0x90] sm:$0xff]  ;;  %v1061_v18 = vld [vmem:[#allocation5 + $0x8] sm:$0xff]  ;;  %v1060_v21 = vld [vmem:[#allocation5] sm:$0xff]  ;;  %p1258_p9 = scmp.lt.s32.totalorder %s1256_s11, %s1252_s9 }
  0x36   : > { %666 = vmatpush.bf16.msra.mxu2 %v1450_v5  ;;  %v1069_v19 = vld [vmem:[#allocation5 + $0x48] sm:$0xff]  ;;  %v1068_v22 = vld [vmem:[#allocation5 + $0x40] sm:$0xff]  ;;  %v913_v26 = vld [vmem:[%s1432_s25 + $0x90] sm:$0xf]  ;;  %p1254_p4 = pnand %p1253_p1, %p1402_p7 }
  0x37   : > { %v1466_v20 = vld [vmem:[#allocation5 + $0x88] sm:$0xff]  ;;  %v1468_v23 = vld [vmem:[#allocation5 + $0x80] sm:$0xff]  ;;  %v1055_v27 = vld [vmem:[%s1432_s25 + $0x98] sm:$0xf0]  ;;  %p1259_p2 = por %p1258_p9, %p1257_p11 }
  0x38   : > { %569 = vmatpush.bf16.msra.mxu0 %v1065_v6  ;;  %1087 = vmatpush.bf16.msra.mxu3 %v1065_v6  ;;  %v841_v24 = vld [vmem:[%s1432_s25] sm:$0xf]  ;;  %v1037_v25 = vld [vmem:[%s1432_s25 + $0x8] sm:$0xf0]  ;;  %v1036_v28 = vld [vmem:[%s1432_s25 + $0x4] sm:$0xf]  ;;  %v914_v33 = vor.u32 %v1055_v27, %v913_v26  ;;  %p1255_p8 = pneg %p1254_p4 }
  0x39   : > { %618 = vmatpush.bf16.msra.mxu1 %v1073_v7  ;;  %v843_v29 = vld [vmem:[%s1432_s25 + $0xc] sm:$0xf0]  ;;  %v849_v30 = vld [vmem:[%s1432_s25 + $0x8] sm:$0xf]  ;;  %v1038_v31 = vld [vmem:[%s1432_s25 + $0x10] sm:$0xf0]  ;;  %v842_v32 = vor.u32 %v1037_v25, %v841_v24 }
  0x3a   : > { %667 = vmatpush.bf16.msra.mxu2 %v1454_v8  ;;  %v846_v34 = vor.u32 %v1036_v28, %v843_v29  ;;  %v850_v35 = vor.u32 %v1038_v31, %v849_v30  ;;  %v853_v36 = vld [vmem:[%s1432_s25 + $0x18] sm:$0xf]  ;;  %v1040_v37 = vld [vmem:[%s1432_s25 + $0x20] sm:$0xf0]  ;;  %v925_v38 = vld [vmem:[%s1432_s25 + $0xa8] sm:$0xf]  ;;  %p1260_p10 = pnand %p1259_p2, %p1255_p8 }
  0x3b   : > { %v1058_v39 = vld [vmem:[%s1432_s25 + $0xb0] sm:$0xf0]  ;;  %v1039_v40 = vld [vmem:[%s1432_s25 + $0x1c] sm:$0xf]  ;;  %v855_v41 = vld [vmem:[%s1432_s25 + $0x24] sm:$0xf0]  ;;  %v854_v44 = vor.u32 %v1040_v37, %v853_v36 }
  0x3c   : > { %570 = vmatpush.bf16.msra.mxu0 %v1064_v9  ;;  %1088 = vmatpush.bf16.msra.mxu3 %v1064_v9  ;;  %v861_v42 = vld [vmem:[%s1432_s25 + $0x20] sm:$0xf]  ;;  %v1041_v43 = vld [vmem:[%s1432_s25 + $0x28] sm:$0xf0]  ;;  %v926_v45 = vor.u32 %v1058_v39, %v925_v38  ;;  %v858_v46 = vor.u32 %v1039_v40, %v855_v41  ;;  %v865_v48 = vld [vmem:[%s1432_s25 + $0x30] sm:$0xf] }
  0x3d   : > { %619 = vmatpush.bf16.msra.mxu1 %v1072_v10  ;;  %v862_v47 = vor.u32 %v1041_v43, %v861_v42  ;;  %v1043_v49 = vld [vmem:[%s1432_s25 + $0x38] sm:$0xf0]  ;;  %v1042_v50 = vld [vmem:[%s1432_s25 + $0x34] sm:$0xf]  ;;  %v915_v52 = vld [vmem:[%s1432_s25 + $0x9c] sm:$0xf0] }
  0x3e   : > { %668 = vmatpush.bf16.msra.mxu2 %v1457_v11  ;;  %v1054_v51 = vld [vmem:[%s1432_s25 + $0x94] sm:$0xf]  ;;  %v867_v53 = vld [vmem:[%s1432_s25 + $0x3c] sm:$0xf0]  ;;  %v873_v54 = vld [vmem:[%s1432_s25 + $0x38] sm:$0xf]  ;;  %v866_v56 = vor.u32 %v1043_v49, %v865_v48 }
  0x3f   : > { %v1044_v55 = vld [vmem:[%s1432_s25 + $0x40] sm:$0xf0]  ;;  %v918_v57 = vor.u32 %v1054_v51, %v915_v52  ;;  %v870_v58 = vor.u32 %v1042_v50, %v867_v53  ;;  %v877_v60 = vld [vmem:[%s1432_s25 + $0x48] sm:$0xf]  ;;  %v1046_v61 = vld [vmem:[%s1432_s25 + $0x50] sm:$0xf0] }
  0x40   : > { %571 = vmatpush.bf16.msra.mxu0 %v1063_v12  ;;  %1089 = vmatpush.bf16.msra.mxu3 %v1063_v12  ;;  %v874_v59 = vor.u32 %v1044_v55, %v873_v54  ;;  %v1045_v62 = vld [vmem:[%s1432_s25 + $0x4c] sm:$0xf]  ;;  %v927_v0 = vld [vmem:[%s1432_s25 + $0xb4] sm:$0xf0]  ;;  %v1047_v3 = vld [vmem:[%s1432_s25 + $0x58] sm:$0xf0] }
  0x41   : > { %620 = vmatpush.bf16.msra.mxu1 %v1071_v13  ;;  %v1057_v63 = vld [vmem:[%s1432_s25 + $0xac] sm:$0xf]  ;;  %v1056_v12 = vld [vmem:[%s1432_s25 + $0xa0] sm:$0xf0]  ;;  %v933_v24 = vld [vmem:[%s1432_s25 + $0xb0] sm:$0xf] }
  0x42   : > { %669 = vmatpush.bf16.msra.mxu2 %v1460_v14  ;;  %v930_v6 = vor.u32 %v1057_v63, %v927_v0  ;;  %v1049_v9 = vld [vmem:[%s1432_s25 + $0x68] sm:$0xf0]  ;;  %v903_v25 = vld [vmem:[%s1432_s25 + $0x84] sm:$0xf0]  ;;  %v909_v26 = vld [vmem:[%s1432_s25 + $0x80] sm:$0xf] }
  0x43   : > { %v1053_v27 = vld [vmem:[%s1432_s25 + $0x88] sm:$0xf0] }
  0x44   : > { %572 = vmatpush.bf16.msra.mxu0 %v1062_v15  ;;  %1090 = vmatpush.bf16.msra.mxu3 %v1062_v15  ;;  %v1050_v15 = vld [vmem:[%s1432_s25 + $0x70] sm:$0xf0]  ;;  %v910_v31 = vor.u32 %v1053_v27, %v909_v26 }
  0x45   : > { %621 = vmatpush.bf16.msra.mxu1 %v1070_v16 }
  0x46   : > { %670 = vmatpush.bf16.msra.mxu2 %v1463_v17 }
  0x48   : > { %573 = vmatpush.bf16.msra.mxu0 %v1061_v18  ;;  %1091 = vmatpush.bf16.msra.mxu3 %v1061_v18 }
  0x49   : > { %622 = vmatpush.bf16.msra.mxu1 %v1069_v19 }
  0x4a   : > { %671 = vmatpush.bf16.msra.mxu2 %v1466_v20 }
  0x4c   : > { %574 = vmatpush.bf16.msra.mxu0 %v1060_v21  ;;  %1092 = vmatpush.bf16.msra.mxu3 %v1060_v21  ;;  %v1052_v21 = vld [vmem:[%s1432_s25 + $0x80] sm:$0xf0] }
  0x4d   : > { %623 = vmatpush.bf16.msra.mxu1 %v1068_v22 }
  0x4e   : > { %672 = vmatpush.bf16.msra.mxu2 %v1468_v23 }
  0x4f   : > { %575 = vmatmul.bf16.vlgmr.msra.gmra.mxu0 %v842_v32  ;;  %605 = vmatmul.bf16.vlgmr.msra.gmra.mxu3 %v914_v33  ;;  %v1533_v32 = vld [vmem:[%s1618_s2] ss:$0 sm:$0xff] }
  0x50   : > { %1093 = vmatpush.bf16.msrb.mxu3 %v1442_v1  ;;  %624 = vmatmul.bf16.vlgmr.msra.gmra.mxu1 %v846_v34  ;;  %v879_v1 = vld [vmem:[%s1432_s25 + $0x54] sm:$0xf0] }
  0x51   : > { %673 = vmatmul.bf16.vlgmr.msra.gmra.mxu2 %v850_v35 }
  0x54   : > { %1094 = vmatpush.bf16.msrb.mxu3 %v1448_v4  ;;  %v878_v4 = vor.u32 %v1046_v61, %v877_v60 }
  0x58   : > { %1095 = vmatpush.bf16.msrb.mxu3 %v1073_v7 }
  0x5c   : > { %1096 = vmatpush.bf16.msrb.mxu3 %v1072_v10  ;;  %v1048_v10 = vld [vmem:[%s1432_s25 + $0x64] sm:$0xf] }
  0x5f   : > { %580 = vmatmul.bf16.gmra.mxu0 %v854_v44  ;;  %610 = vmatmul.bf16.gmra.mxu3 %v926_v45 }
  0x60   : > { %1097 = vmatpush.bf16.msrb.mxu3 %v1071_v13  ;;  %629 = vmatmul.bf16.gmra.mxu1 %v858_v46  ;;  %v891_v13 = vld [vmem:[%s1432_s25 + $0x6c] sm:$0xf0] }
  0x61   : > { %678 = vmatmul.bf16.gmra.mxu2 %v862_v47  ;;  %v894_v18 = vor.u32 %v1048_v10, %v891_v13 }
  0x64   : > { %1098 = vmatpush.bf16.msrb.mxu3 %v1070_v16 }
  0x68   : > { %1099 = vmatpush.bf16.msrb.mxu3 %v1069_v19 }
  0x6c   : > { %1100 = vmatpush.bf16.msrb.mxu3 %v1068_v22  ;;  %v1051_v22 = vld [vmem:[%s1432_s25 + $0x7c] sm:$0xf] }
  0x6d   : > { %v906_v30 = vor.u32 %v1051_v22, %v903_v25 }
  0x6f   : > { %585 = vmatmul.bf16.gmra.mxu0 %v866_v56  ;;  %654 = vmatmul.bf16.vlgmr.msrb.gmra.mxu3 %v918_v57 }
  0x70   : > { %1101 = vmatpush.bf16.msra.mxu3 %v1444_v2  ;;  %634 = vmatmul.bf16.gmra.mxu1 %v870_v58  ;;  %v885_v2 = vld [vmem:[%s1432_s25 + $0x50] sm:$0xf] }
  0x71   : > { %683 = vmatmul.bf16.gmra.mxu2 %v874_v59  ;;  %v886_v7 = vor.u32 %v1047_v3, %v885_v2 }
  0x74   : > { %1102 = vmatpush.bf16.msra.mxu3 %v1450_v5  ;;  %v882_v5 = vor.u32 %v1045_v62, %v879_v1 }
  0x78   : > { %1103 = vmatpush.bf16.msra.mxu3 %v1454_v8  ;;  %v889_v8 = vld [vmem:[%s1432_s25 + $0x60] sm:$0xf] }
  0x79   : > { %v890_v16 = vor.u32 %v1049_v9, %v889_v8 }
  0x7c   : > { %1104 = vmatpush.bf16.msra.mxu3 %v1457_v11  ;;  %v921_v11 = vld [vmem:[%s1432_s25 + $0x98] sm:$0xf] }
  0x7f   : > { %590 = vmatmul.bf16.gmra.mxu0 %v878_v4  ;;  %659 = vmatmul.bf16.gmra.mxu3 %v930_v6 }
  0x80   : > { %1105 = vmatpush.bf16.msra.mxu3 %v1460_v14  ;;  %639 = vmatmul.bf16.gmra.mxu1 %v882_v5  ;;  %v897_v14 = vld [vmem:[%s1432_s25 + $0x68] sm:$0xf] }
  0x81   : > { %688 = vmatmul.bf16.gmra.mxu2 %v886_v7  ;;  %v898_v19 = vor.u32 %v1050_v15, %v897_v14 }
  0x84   : > { %1106 = vmatpush.bf16.msra.mxu3 %v1463_v17  ;;  %v922_v17 = vor.u32 %v1056_v12, %v921_v11 }
  0x88   : > { %1107 = vmatpush.bf16.msra.mxu3 %v1466_v20  ;;  %v901_v20 = vld [vmem:[%s1432_s25 + $0x78] sm:$0xf] }
  0x89   : > { %v902_v28 = vor.u32 %v1052_v21, %v901_v20 }
  0x8c   : > { %1108 = vmatpush.bf16.msra.mxu3 %v1468_v23  ;;  %v1059_v23 = vld [vmem:[%s1432_s25 + $0xb8] sm:$0xf0] }
  0x8d   : > { %v934_v29 = vor.u32 %v1059_v23, %v933_v24 }
  0x8f   : > { %595 = vmatmul.bf16.gmra.mxu0 %v890_v16  ;;  %703 = vmatmul.bf16.vlgmr.msra.gmra.mxu3 %v922_v17 }
  0x90   : > { %644 = vmatmul.bf16.gmra.mxu1 %v894_v18 }
  0x91   : > { %693 = vmatmul.bf16.gmra.mxu2 %v898_v19 }
  0x9f   : > { %600 = vmatmul.bf16.gmra.mxu0 %v902_v28  ;;  %708 = vmatmul.bf16.gmra.mxu3 %v934_v29 }
  0xa0   : > { %649 = vmatmul.bf16.gmra.mxu1 %v906_v30 }
  0xa1   : > { %698 = vmatmul.bf16.gmra.mxu2 %v910_v31 }
  0xcc   : > { %v576_v33 = vpop.f32.mrf.mxu0 }
  0xcd   : > { %v577_v34 = vadd.f32 %v1533_v32, %v576_v33  ;;  %v625_v35 = vpop.f32.mrf.mxu1 }
  0xcf   : > { %v626_v36 = vadd.f32 %v625_v35, %v577_v34 }
  0xd2   : > { %v1537_v37 = vpop.f32.mrf.mxu3 }
  0xd3   : > { %v607_v28 = vadd.f32 %v1533_v32, %v1537_v37 }
  0xd4   : > { %v674_v38 = vpop.f32.mrf.mxu2  ;;  %v578_v40 = vpop.f32.mrf.mxu0 }
  0xd5   : > { %v675_v39 = vadd.f32 %v674_v38, %v626_v36  ;;  %v627_v41 = vpop.f32.mrf.mxu1  ;;  %v579_v42 = vadd.f32 %v1533_v32, %v578_v40 }
  0xd7   : > { %714 = vst [vmem:[%s1539_s20] sm:$0xff] %v675_v39  ;;  %v628_v43 = vadd.f32 %v627_v41, %v579_v42 }
  0xda   : > { %v1543_v44 = vpop.f32.mrf.mxu3 }
  0xdb   : > { %v609_v40 = vadd.f32 %v1533_v32, %v1543_v44 }
  0xdc   : > { %v676_v45 = vpop.f32.mrf.mxu2  ;;  %v581_v47 = vpop.f32.mrf.mxu0 }
  0xdd   : > { %v677_v46 = vadd.f32 %v676_v45, %v628_v43  ;;  %v582_v48 = vadd.f32 %v1533_v32, %v581_v47  ;;  %v630_v49 = vpop.f32.mrf.mxu1 }
  0xdf   : > { %715 = vst [vmem:[%s1539_s20 + $0x8] sm:$0xff] %v677_v46  ;;  %v631_v50 = vadd.f32 %v630_v49, %v582_v48 }
  0xe2   : > { %v1547_v51 = vpop.f32.mrf.mxu3 }
  0xe3   : > { %v612_v49 = vadd.f32 %v1533_v32, %v1547_v51 }
  0xe4   : > { %v679_v52 = vpop.f32.mrf.mxu2  ;;  %v583_v54 = vpop.f32.mrf.mxu0 }
  0xe5   : > { %v680_v53 = vadd.f32 %v679_v52, %v631_v50  ;;  %v632_v55 = vpop.f32.mrf.mxu1  ;;  %v584_v56 = vadd.f32 %v1533_v32, %v583_v54 }
  0xe7   : > { %716 = vst [vmem:[%s1539_s20 + $0x10] sm:$0xff] %v680_v53  ;;  %v633_v57 = vadd.f32 %v632_v55, %v584_v56 }
  0xea   : > { %v1551_v58 = vpop.f32.mrf.mxu3 }
  0xec   : > { %v681_v59 = vpop.f32.mrf.mxu2  ;;  %v586_v61 = vpop.f32.mrf.mxu0 }
  0xed   : > { %v682_v60 = vadd.f32 %v681_v59, %v633_v57  ;;  %v587_v62 = vadd.f32 %v1533_v32, %v586_v61  ;;  %v635_v63 = vpop.f32.mrf.mxu1  ;;  %v614_v59 = vadd.f32 %v1533_v32, %v1551_v58 }
  0xef   : > { %717 = vst [vmem:[%s1539_s20 + $0x18] sm:$0xff] %v682_v60  ;;  %v636_v0 = vadd.f32 %v635_v63, %v587_v62 }
  0xf2   : > { %v655_v1 = vpop.f32.mrf.mxu3 }
  0xf3   : > { %v656_v30 = vadd.f32 %v655_v1, %v607_v28 }
  0xf4   : > { %v684_v2 = vpop.f32.mrf.mxu2  ;;  %v588_v4 = vpop.f32.mrf.mxu0 }
  0xf5   : > { %v685_v3 = vadd.f32 %v684_v2, %v636_v0  ;;  %v637_v6 = vpop.f32.mrf.mxu1  ;;  %v589_v5 = vadd.f32 %v1533_v32, %v588_v4 }
  0xf7   : > { %718 = vst [vmem:[%s1539_s20 + $0x20] sm:$0xff] %v685_v3  ;;  %v638_v7 = vadd.f32 %v637_v6, %v589_v5 }
  0xfa   : > { %v657_v8 = vpop.f32.mrf.mxu3 }
  0xfb   : > { %v658_v41 = vadd.f32 %v657_v8, %v609_v40 }
  0xfc   : > { %v686_v9 = vpop.f32.mrf.mxu2  ;;  %v591_v11 = vpop.f32.mrf.mxu0 }
  0xfd   : > { %v687_v10 = vadd.f32 %v686_v9, %v638_v7  ;;  %v592_v12 = vadd.f32 %v1533_v32, %v591_v11  ;;  %v640_v13 = vpop.f32.mrf.mxu1 }
  0xff   : > { %719 = vst [vmem:[%s1539_s20 + $0x28] sm:$0xff] %v687_v10  ;;  %v641_v14 = vadd.f32 %v640_v13, %v592_v12 }
 0x102   : > { %v660_v15 = vpop.f32.mrf.mxu3 }
 0x103   : > { %v661_v52 = vadd.f32 %v660_v15, %v612_v49 }
 0x104   : > { %v689_v16 = vpop.f32.mrf.mxu2  ;;  %v593_v18 = vpop.f32.mrf.mxu0 }
 0x105   : > { %v690_v17 = vadd.f32 %v689_v16, %v641_v14  ;;  %v642_v19 = vpop.f32.mrf.mxu1  ;;  %v594_v20 = vadd.f32 %v1533_v32, %v593_v18 }
 0x107   : > { %720 = vst [vmem:[%s1539_s20 + $0x30] sm:$0xff] %v690_v17  ;;  %v643_v21 = vadd.f32 %v642_v19, %v594_v20 }
 0x10a   : > { %v662_v22 = vpop.f32.mrf.mxu3 }
 0x10b   : > { %v663_v60 = vadd.f32 %v662_v22, %v614_v59 }
 0x10c   : > { %v691_v24 = vpop.f32.mrf.mxu2  ;;  %v596_v25 = vpop.f32.mrf.mxu0 }
 0x10d   : > { %v692_v23 = vadd.f32 %v691_v24, %v643_v21  ;;  %v597_v26 = vadd.f32 %v1533_v32, %v596_v25  ;;  %v645_v27 = vpop.f32.mrf.mxu1 }
 0x10f   : > { %721 = vst [vmem:[%s1539_s20 + $0x38] sm:$0xff] %v692_v23  ;;  %v646_v29 = vadd.f32 %v645_v27, %v597_v26 }
 0x112   : > { %v704_v31 = vpop.f32.mrf.mxu3 }
 0x113   : > { %v705_v34 = vadd.f32 %v704_v31, %v656_v30 }
 0x114   : > { %v694_v33 = vpop.f32.mrf.mxu2  ;;  %v598_v36 = vpop.f32.mrf.mxu0 }
 0x115   : > { %v695_v35 = vadd.f32 %v694_v33, %v646_v29  ;;  %726 = vst [vmem:[%s1539_s20 + $0x60] sm:$0xff] %v705_v34  ;;  %v647_v38 = vpop.f32.mrf.mxu1  ;;  %v599_v39 = vadd.f32 %v1533_v32, %v598_v36 }
 0x117   : > { %722 = vst [vmem:[%s1539_s20 + $0x40] sm:$0xff] %v695_v35  ;;  %v648_v37 = vadd.f32 %v647_v38, %v599_v39 }
 0x11a   : > { %v706_v42 = vpop.f32.mrf.mxu3 }
 0x11b   : > { %v707_v45 = vadd.f32 %v706_v42, %v658_v41 }
 0x11c   : > { %v696_v43 = vpop.f32.mrf.mxu2  ;;  %v601_v47 = vpop.f32.mrf.mxu0 }
 0x11d   : > { %v697_v46 = vadd.f32 %v696_v43, %v648_v37  ;;  %727 = vst [vmem:[%s1539_s20 + $0x68] sm:$0xff] %v707_v45  ;;  %v602_v48 = vadd.f32 %v1533_v32, %v601_v47  ;;  %v650_v50 = vpop.f32.mrf.mxu1 }
 0x11f   : > { %723 = vst [vmem:[%s1539_s20 + $0x48] sm:$0xff] %v697_v46  ;;  %v651_v44 = vadd.f32 %v650_v50, %v602_v48 }
 0x122   : > { %v709_v53 = vpop.f32.mrf.mxu3 }
 0x123   : > { %v710_v55 = vadd.f32 %v709_v53, %v661_v52 }
 0x124   : > { %v699_v54 = vpop.f32.mrf.mxu2  ;;  %v603_v57 = vpop.f32.mrf.mxu0 }
 0x125   : > { %v700_v56 = vadd.f32 %v699_v54, %v651_v44  ;;  %728 = vst [vmem:[%s1539_s20 + $0x70] sm:$0xff] %v710_v55  ;;  %v604_v51 = vadd.f32 %v1533_v32, %v603_v57  ;;  %v652_v61 = vpop.f32.mrf.mxu1 }
 0x127   : > { %724 = vst [vmem:[%s1539_s20 + $0x50] sm:$0xff] %v700_v56  ;;  %v653_v62 = vadd.f32 %v652_v61, %v604_v51 }
 0x12a   : > { %v711_v63 = vpop.f32.mrf.mxu3 }
 0x12b   : > { %v712_v1 = vadd.f32 %v711_v63, %v663_v60 }
 0x12c   : > { %v701_v0 = vpop.f32.mrf.mxu2 }
 0x12d   : > { %v702_v2 = vadd.f32 %v701_v0, %v653_v62  ;;  %729 = vst [vmem:[%s1539_s20 + $0x78] sm:$0xff] %v712_v1 }
 0x12f   : > { %725 = vst [vmem:[%s1539_s20 + $0x58] sm:$0xff] %v702_v2 }
 0x130   : > { %1263 = shalt.err (!%p1260_p10)
}
 0x131   : > { %s1313_s10 = smov 128   ;;  %s1314_s18 = smov 8  }
 0x132   : > { %1118 = dma.vmem_to_hbm [thread:$0]  (%p1402_p7), %s744_s29, 2048, %s746_s16, %s731_s30, %s1313_s10, %s1313_s10, %s1314_s18  }
 0x133 PF: > { %s760_s23 = sand.u32 1, %s1294_s12   ;;  %p1625_p12 = scmp.ge.s32.totalorder %s1306_s15, 2 }
 0x134   : > { %s761_s17 = scalar_lea.sflag [#allocation4], %s760_s23 }
 0x135   : > { %p1129_p13 = pnand %p1625_p12, %p1370_p6 }
 0x137   : > { %p1130_p0 = pneg %p1129_p13 }
 0x139   : > { %1289 = dma.done.wait (%p1130_p0), %s761_s17, 2048  }
 0x13a   : > { %1291 = vsyncadd (%p1130_p0), %s761_s17, 4294965248  ;;  %p17_p3 = scmp.ge.s32.totalorder %s1388_s26, 4   ;;  %s1626_s12 = smov %s1298_s13 }
 0x13b   : > { %s1627_s13 = smov %s1302_s14  ;;  %s1628_s14 = smov %s1398_s4 }
 0x13c   : > { %s1629_s15 = smov %s1388_s26  ;;  %19 = sbr.rel (!%p17_p3) target bundleno = 6 (0x6), region = 81 }
 0x141   :  { %767 = vsyncpa [#allocation3], 1 }
 0x142   :  { %769 = vsyncpa [#allocation3 + $0x1], 1 }
 0x143   :  { %770 = vsyncpa [#allocation6], 1 }
 0x144   :  { %771 = vsyncpa [#allocation4], 1 }
 0x145   :  { %773 = vsyncpa [#allocation4 + $0x1], 1 }

</bundles_post_ra>
